<compile_context>
chip_gen: v7x
topology: tpu7x:2x2x1
jax: 0.10.0
libtpu: 0.0.40
codegen_flags: <defaults>
</compile_context>

<pallas_src>
import functools

import jax
import jax.numpy as jnp
from jax import lax
from jax.experimental import pallas as pl
from jax.experimental.pallas import tpu as pltpu

_LANE = 128          # boxes on the lane axis
_SUBLANE = 8         # f32 sublane granularity
_TR_MAX = 1024       # max sublane rows per grid step -> 1024*128 = 128K boxes
                     # per-step VMEM: 2 in x 2 bufs x 4*1024*128*4B + out ~ 9 MiB,
                     # well under the 32 MiB scoped default on every generation.
_MIN_PALLAS_BOXES = 8192   # below this, a fused XLA elementwise pass is faster
                           # than the layout copy + pallas_call fixed cost.


def _ceil_to(x, m):
    return -(-x // m) * m


def _box_loss_math(p, t, loss_type):
    """Shared per-box IoU / GIoU loss math on component-major f32 arrays.

    p, t: tuples (cx, cy, w, h); every entry has the same shape.
    Returns the per-box loss with that shape.
    """
    pcx, pcy, pw, ph = p
    tcx, tcy, tw, th = t

    p_hw, p_hh = pw * 0.5, ph * 0.5
    t_hw, t_hh = tw * 0.5, th * 0.5

    # Corner coordinates hoisted once; reused by the intersection and (for
    # giou) the enclosing box -> 8 fewer VALU subtracts per tile.
    p_x1, p_y1 = pcx - p_hw, pcy - p_hh
    p_x2, p_y2 = pcx + p_hw, pcy + p_hh
    t_x1, t_y1 = tcx - t_hw, tcy - t_hh
    t_x2, t_y2 = tcx + t_hw, tcy + t_hh

    tl_x = jnp.maximum(p_x1, t_x1)
    tl_y = jnp.maximum(p_y1, t_y1)
    br_x = jnp.minimum(p_x2, t_x2)
    br_y = jnp.minimum(p_y2, t_y2)

    area_p = pw * ph
    area_g = tw * th

    valid = (tl_x < br_x) & (tl_y < br_y)
    area_i = jnp.where(valid, (br_x - tl_x) * (br_y - tl_y), 0.0)
    area_u = area_p + area_g - area_i
    # exact divide kept (approx reciprocal would risk the 1e-5 parity tolerance)
    iou = area_i / (area_u + 1e-16)

    if loss_type == "iou":
        return 1.0 - iou * iou
    elif loss_type == "giou":
        c_tl_x = jnp.minimum(p_x1, t_x1)
        c_tl_y = jnp.minimum(p_y1, t_y1)
        c_br_x = jnp.maximum(p_x2, t_x2)
        c_br_y = jnp.maximum(p_y2, t_y2)
        area_c = (c_br_x - c_tl_x) * (c_br_y - c_tl_y)
        giou = iou - (area_c - area_u) / jnp.maximum(area_c, 1e-16)
        return 1.0 - jnp.clip(giou, -1.0, 1.0)
    raise NotImplementedError(loss_type)


def _iou_loss_slab_kernel(loss_type, p_ref, t_ref, o_ref):
    """reduction='none' variant: writes the full (TR, 128) per-box loss tile."""
    p = p_ref[...].astype(jnp.float32)
    t = t_ref[...].astype(jnp.float32)
    loss = _box_loss_math((p[0], p[1], p[2], p[3]),
                          (t[0], t[1], t[2], t[3]), loss_type)
    o_ref[...] = loss


def _iou_loss_psum_kernel(loss_type, n, tr, p_ref, t_ref, o_ref):
    """reduction='mean'/'sum' variant: per-step (8, 128) partial sums.

    Padded lanes are masked via the global box index (< n), so the JAX-side
    final sum over the tiny partial slab is exact w.r.t. the real boxes.
    """
    p = p_ref[...].astype(jnp.float32)
    t = t_ref[...].astype(jnp.float32)
    loss = _box_loss_math((p[0], p[1], p[2], p[3]),
                          (t[0], t[1], t[2], t[3]), loss_type)

    row = lax.broadcasted_iota(jnp.int32, (tr, _LANE), 0)
    lane = lax.broadcasted_iota(jnp.int32, (tr, _LANE), 1)
    gidx = (pl.program_id(0) * tr + row) * _LANE + lane
    loss = jnp.where(gidx < n, loss, 0.0)

    # (tr,128) -> (tr//8, 8, 128) is a tile-aligned reshape; axis-0 reduce is
    # pure VALU vreg adds (no XLU).
    o_ref[...] = jnp.sum(loss.reshape(tr // _SUBLANE, _SUBLANE, _LANE), axis=0)


def iou_loss(pred, target, *, reduction="none", loss_type="iou",
             min_pallas_boxes=_MIN_PALLAS_BOXES):
    """JAX/Pallas equivalent of IOUloss.forward."""
    assert pred.shape[0] == target.shape[0]
    pred = pred.reshape(-1, 4)
    target = target.reshape(-1, 4)
    n = pred.shape[0]

    if loss_type == "toffe":
        # TODO(synk): 'toffe' is two scalar MSE means over (x, y) and the angle
        # channel; it has no per-box kernel structure, so it stays in plain JAX.
        p32 = pred.astype(jnp.float32)
        t32 = target.astype(jnp.float32)
        loss = (jnp.mean((p32[:, :2] - t32[:, :2]) ** 2)
                + jnp.mean((p32[:, 2] - t32[:, 2]) ** 2))
        if reduction == "mean":
            loss = loss.mean()
        elif reduction == "sum":
            loss = loss.sum()
        return loss

    # --- Small-N fast path -------------------------------------------------
    # Typical YOLOX calls pass O(1e2-1e3) boxes; there the layout copy and the
    # pallas_call fixed cost dominate, and one fused XLA elementwise pass wins.
    if n < min_pallas_boxes:
        p32 = pred.astype(jnp.float32)
        t32 = target.astype(jnp.float32)
        loss = _box_loss_math(
            (p32[:, 0], p32[:, 1], p32[:, 2], p32[:, 3]),
            (t32[:, 0], t32[:, 1], t32[:, 2], t32[:, 3]), loss_type)
        if reduction == "mean":
            loss = loss.mean()
        elif reduction == "sum":
            loss = loss.sum()
        return loss

    # --- Pallas path --------------------------------------------------------
    r = -(-n // _LANE)
    r_pad = _ceil_to(r, _SUBLANE)
    if r_pad >= 2 * _SUBLANE:
        # >= 2 grid steps so both v7x TensorCores engage (full-chip HBM BW);
        # neutral on v5e/v6e (single TC).  Cap tile rows at _TR_MAX.
        num_steps = max(2, -(-r_pad // _TR_MAX))
    else:
        num_steps = 1
    tr = _ceil_to(-(-r_pad // num_steps), _SUBLANE)
    r_pad = tr * num_steps
    n_pad = r_pad * _LANE

    # (n,4) -> (4, r_pad, 128): one fused transpose+pad copy per input (the
    # trailing reshape is a bitcast).  Fully eliminating this HBM pass needs
    # the caller to supply component-major (4, N) boxes, or an in-kernel lane
    # de-interleave of the interleaved layout; kept as a single copy here.
    p = jnp.pad(pred.T, ((0, 0), (0, n_pad - n))).reshape(4, r_pad, _LANE)
    t = jnp.pad(target.T, ((0, 0), (0, n_pad - n))).reshape(4, r_pad, _LANE)

    in_specs = [
        pl.BlockSpec((4, tr, _LANE), lambda i: (0, i, 0)),
        pl.BlockSpec((4, tr, _LANE), lambda i: (0, i, 0)),
    ]
    cparams = pltpu.CompilerParams(dimension_semantics=("parallel",))

    if reduction in ("mean", "sum"):
        kernel = functools.partial(_iou_loss_psum_kernel, loss_type, n, tr)
        partials = pl.pallas_call(
            kernel,
            out_shape=jax.ShapeDtypeStruct((num_steps * _SUBLANE, _LANE),
                                           jnp.float32),
            grid=(num_steps,),
            in_specs=in_specs,
            out_specs=pl.BlockSpec((_SUBLANE, _LANE), lambda i: (i, 0)),
            compiler_params=cparams,
        )(p, t)
        total = partials.sum()
        if reduction == "mean":
            return total / jnp.float32(n)
        return total

    kernel = functools.partial(_iou_loss_slab_kernel, loss_type)
    out = pl.pallas_call(
        kernel,
        out_shape=jax.ShapeDtypeStruct((r_pad, _LANE), jnp.float32),
        grid=(num_steps,),
        in_specs=in_specs,
        out_specs=pl.BlockSpec((tr, _LANE), lambda i: (i, 0)),
        compiler_params=cparams,
    )(p, t)
    return out.reshape(-1)[:n]


def _iou_loss_ref(pred, target, *, reduction="none", loss_type="iou"):
    """Pure-JAX reference mirroring the PyTorch module."""
    pred = pred.reshape(-1, 4).astype(jnp.float32)
    target = target.reshape(-1, 4).astype(jnp.float32)
    tl = jnp.maximum(pred[:, :2] - pred[:, 2:] / 2, target[:, :2] - target[:, 2:] / 2)
    br = jnp.minimum(pred[:, :2] + pred[:, 2:] / 2, target[:, :2] + target[:, 2:] / 2)
    area_p = jnp.prod(pred[:, 2:], axis=1)
    area_g = jnp.prod(target[:, 2:], axis=1)
    en = jnp.prod((tl < br).astype(jnp.float32), axis=1)
    area_i = jnp.prod(br - tl, axis=1) * en
    area_u = area_p + area_g - area_i
    iou = area_i / (area_u + 1e-16)
    if loss_type == "iou":
        loss = 1 - iou ** 2
    elif loss_type == "giou":
        c_tl = jnp.minimum(pred[:, :2] - pred[:, 2:] / 2, target[:, :2] - target[:, 2:] / 2)
        c_br = jnp.maximum(pred[:, :2] + pred[:, 2:] / 2, target[:, :2] + target[:, 2:] / 2)
        area_c = jnp.prod(c_br - c_tl, axis=1)
        giou = iou - (area_c - area_u) / jnp.maximum(area_c, 1e-16)
        loss = 1 - jnp.clip(giou, -1.0, 1.0)
    else:
        raise NotImplementedError(loss_type)
    if reduction == "mean":
        loss = loss.mean()
    elif reduction == "sum":
        loss = loss.sum()
    return loss


if __name__ == "__main__":
    key = jax.random.PRNGKey(0)
    ok = True

    def make_boxes(k, n):
        k1, k2, k3, k4 = jax.random.split(k, 4)
        pred = jnp.concatenate(
            [jax.random.uniform(k1, (n, 2), jnp.float32, 0.0, 10.0),
             jax.random.uniform(k2, (n, 2), jnp.float32, 0.5, 5.0)], axis=1)
        target = jnp.concatenate(
            [jax.random.uniform(k3, (n, 2), jnp.float32, 0.0, 10.0),
             jax.random.uniform(k4, (n, 2), jnp.float32, 0.5, 5.0)], axis=1)
        return pred, target

    # (n_boxes, force_pallas): small n exercises both the fast path and, when
    # forced, the single-step Pallas path; 20000 exercises the 2-step Pallas
    # path (and on v7x, both TensorCores).
    cases = [(8, False), (300, False), (300, True), (20000, False)]
    for n_boxes, force in cases:
        key, sub = jax.random.split(key)
        pred, target = make_boxes(sub, n_boxes)
        min_boxes = 0 if force else _MIN_PALLAS_BOXES
        for loss_type in ("iou", "giou"):
            for reduction in ("none", "mean", "sum"):
                out = iou_loss(pred, target, reduction=reduction,
                               loss_type=loss_type, min_pallas_boxes=min_boxes)
                out = jax.block_until_ready(out)
                ref = _iou_loss_ref(pred, target, reduction=reduction,
                                    loss_type=loss_type)
                if not jnp.allclose(out, ref, atol=1e-4, rtol=1e-5):
                    ok = False

    if ok:
        print("KERNEL_OK")
</pallas_src>

<mosaic_0001>
module attributes {stable_mosaic.version = 11 : i64} {
  func.func @_iou_loss_slab_kernel(%arg0: i32, %arg1: memref<4x8x128xf32, #tpu.memory_space<vmem>>, %arg2: memref<4x8x128xf32, #tpu.memory_space<vmem>>, %arg3: memref<8x128xf32, #tpu.memory_space<vmem>>) attributes {dimension_semantics = [#tpu.dimension_semantics<parallel>], iteration_bounds = array<i64: 1>, scalar_prefetch = 0 : i64, scratch_operands = 0 : i64, tpu.core_type = #tpu.core_type<tc>, window_params = [{transform_indices = @transform_0, window_bounds = array<i64: 4, 8, 128>}, {transform_indices = @transform_1, window_bounds = array<i64: 4, 8, 128>}, {transform_indices = @transform_2, window_bounds = array<i64: 8, 128>}]} {
    %c0 = arith.constant 0 : index
    %c0_0 = arith.constant 0 : index
    %c0_1 = arith.constant 0 : index
    %0 = vector.load %arg1[%c0, %c0_0, %c0_1] : memref<4x8x128xf32, #tpu.memory_space<vmem>>, vector<4x8x128xf32>
    %c0_2 = arith.constant 0 : index
    %c0_3 = arith.constant 0 : index
    %c0_4 = arith.constant 0 : index
    %1 = vector.load %arg2[%c0_2, %c0_3, %c0_4] : memref<4x8x128xf32, #tpu.memory_space<vmem>>, vector<4x8x128xf32>
    %2 = vector.extract_strided_slice %0 {offsets = [0, 0, 0], sizes = [1, 8, 128], strides = [1, 1, 1]} : vector<4x8x128xf32> to vector<1x8x128xf32>
    %3 = vector.shape_cast %2 : vector<1x8x128xf32> to vector<8x128xf32>
    %4 = vector.extract_strided_slice %0 {offsets = [1, 0, 0], sizes = [1, 8, 128], strides = [1, 1, 1]} : vector<4x8x128xf32> to vector<1x8x128xf32>
    %5 = vector.shape_cast %4 : vector<1x8x128xf32> to vector<8x128xf32>
    %6 = vector.extract_strided_slice %0 {offsets = [2, 0, 0], sizes = [1, 8, 128], strides = [1, 1, 1]} : vector<4x8x128xf32> to vector<1x8x128xf32>
    %7 = vector.shape_cast %6 : vector<1x8x128xf32> to vector<8x128xf32>
    %8 = vector.extract_strided_slice %0 {offsets = [3, 0, 0], sizes = [1, 8, 128], strides = [1, 1, 1]} : vector<4x8x128xf32> to vector<1x8x128xf32>
    %9 = vector.shape_cast %8 : vector<1x8x128xf32> to vector<8x128xf32>
    %10 = vector.extract_strided_slice %1 {offsets = [0, 0, 0], sizes = [1, 8, 128], strides = [1, 1, 1]} : vector<4x8x128xf32> to vector<1x8x128xf32>
    %11 = vector.shape_cast %10 : vector<1x8x128xf32> to vector<8x128xf32>
    %12 = vector.extract_strided_slice %1 {offsets = [1, 0, 0], sizes = [1, 8, 128], strides = [1, 1, 1]} : vector<4x8x128xf32> to vector<1x8x128xf32>
    %13 = vector.shape_cast %12 : vector<1x8x128xf32> to vector<8x128xf32>
    %14 = vector.extract_strided_slice %1 {offsets = [2, 0, 0], sizes = [1, 8, 128], strides = [1, 1, 1]} : vector<4x8x128xf32> to vector<1x8x128xf32>
    %15 = vector.shape_cast %14 : vector<1x8x128xf32> to vector<8x128xf32>
    %16 = vector.extract_strided_slice %1 {offsets = [3, 0, 0], sizes = [1, 8, 128], strides = [1, 1, 1]} : vector<4x8x128xf32> to vector<1x8x128xf32>
    %17 = vector.shape_cast %16 : vector<1x8x128xf32> to vector<8x128xf32>
    %cst = arith.constant 5.000000e-01 : f32
    %18 = vector.broadcast %cst : f32 to vector<8x128xf32>
    %19 = arith.mulf %7, %18 : vector<8x128xf32>
    %cst_5 = arith.constant 5.000000e-01 : f32
    %20 = vector.broadcast %cst_5 : f32 to vector<8x128xf32>
    %21 = arith.mulf %9, %20 : vector<8x128xf32>
    %cst_6 = arith.constant 5.000000e-01 : f32
    %22 = vector.broadcast %cst_6 : f32 to vector<8x128xf32>
    %23 = arith.mulf %15, %22 : vector<8x128xf32>
    %cst_7 = arith.constant 5.000000e-01 : f32
    %24 = vector.broadcast %cst_7 : f32 to vector<8x128xf32>
    %25 = arith.mulf %17, %24 : vector<8x128xf32>
    %26 = arith.subf %3, %19 : vector<8x128xf32>
    %27 = arith.subf %5, %21 : vector<8x128xf32>
    %28 = arith.addf %3, %19 : vector<8x128xf32>
    %29 = arith.addf %5, %21 : vector<8x128xf32>
    %30 = arith.subf %11, %23 : vector<8x128xf32>
    %31 = arith.subf %13, %25 : vector<8x128xf32>
    %32 = arith.addf %11, %23 : vector<8x128xf32>
    %33 = arith.addf %13, %25 : vector<8x128xf32>
    %34 = arith.maximumf %26, %30 : vector<8x128xf32>
    %35 = arith.maximumf %27, %31 : vector<8x128xf32>
    %36 = arith.minimumf %28, %32 : vector<8x128xf32>
    %37 = arith.minimumf %29, %33 : vector<8x128xf32>
    %38 = arith.mulf %7, %9 : vector<8x128xf32>
    %39 = arith.mulf %15, %17 : vector<8x128xf32>
    %40 = arith.cmpf olt, %34, %36 : vector<8x128xf32>
    %41 = arith.cmpf olt, %35, %37 : vector<8x128xf32>
    %42 = arith.andi %40, %41 : vector<8x128xi1>
    %43 = arith.subf %36, %34 : vector<8x128xf32>
    %44 = arith.subf %37, %35 : vector<8x128xf32>
    %45 = arith.mulf %43, %44 : vector<8x128xf32>
    %cst_8 = arith.constant 0.000000e+00 : f32
    %46 = vector.broadcast %cst_8 : f32 to vector<8x128xf32>
    %47 = arith.select %42, %45, %46 : vector<8x128xi1>, vector<8x128xf32>
    %48 = arith.addf %38, %39 : vector<8x128xf32>
    %49 = arith.subf %48, %47 : vector<8x128xf32>
    %cst_9 = arith.constant 1.000000e-16 : f32
    %50 = vector.broadcast %cst_9 : f32 to vector<8x128xf32>
    %51 = arith.addf %49, %50 : vector<8x128xf32>
    %52 = arith.divf %47, %51 : vector<8x128xf32>
    %53 = arith.mulf %52, %52 : vector<8x128xf32>
    %cst_10 = arith.constant 1.000000e+00 : f32
    %54 = vector.broadcast %cst_10 : f32 to vector<8x128xf32>
    %55 = arith.subf %54, %53 : vector<8x128xf32>
    %c0_11 = arith.constant 0 : index
    %c0_12 = arith.constant 0 : index
    %56 = vector.load %arg3[%c0_11, %c0_12] : memref<8x128xf32, #tpu.memory_space<vmem>>, vector<8x128xf32>
    tpu.vector_store %arg3[%c0_11, %c0_12], %55 {strides = array<i32>} : memref<8x128xf32, #tpu.memory_space<vmem>>, vector<8x128xf32>,
    return
  }
  func.func @transform_0(%arg0: i32) -> (i32, i32, i32) {
    %c0_i32 = arith.constant 0 : i32
    %c0_i32_0 = arith.constant 0 : i32
    %c0_i32_1 = arith.constant 0 : i32
    return %c0_i32, %arg0, %c0_i32_0 : i32, i32, i32
  }
  func.func @transform_1(%arg0: i32) -> (i32, i32, i32) {
    %c0_i32 = arith.constant 0 : i32
    %c0_i32_0 = arith.constant 0 : i32
    %c0_i32_1 = arith.constant 0 : i32
    return %c0_i32, %arg0, %c0_i32_0 : i32, i32, i32
  }
  func.func @transform_2(%arg0: i32) -> (i32, i32) {
    %c0_i32 = arith.constant 0 : i32
    %c0_i32_0 = arith.constant 0 : i32
    return %arg0, %c0_i32 : i32, i32
  }
}

</mosaic_0001>

<bundles_post_ra>
// kernel: tpu_custom_call.1
= control target key start
LH: loop header
LB: loop body
LE: loop exit
PB: predicated region body
PF: predicated region fallthrough
CT: control target
= control target key end

     0   :  { %7 = vsyncpa [#allocation3], 0  ;;  %s232_s0 = inlined_call_operand.hbm [shape: f32[4,8,128], index: 0, kind: input, shape index: {}]   ;;  %s233_s1 = inlined_call_operand.hbm [shape: f32[4,8,128], index: 1, kind: input, shape index: {}]   ;;  %s234_s2 = inlined_call_operand.hbm [shape: f32[8,128], index: 2, kind: output, shape index: {}]  }
   0x1   :  { %8 = vsyncpa [#allocation6], 0 }
   0x2   :  { %9 = vsyncpa [#allocation4], 0  ;;  %s176_s9 = smov [#allocation2]   ;;  %s104_s13 = scalar_lea.hbm %s232_s0, 512 }
   0x3   :  { %s15_s10 = sshll.u32 %s176_s9, 4  ;;  %p105_p0 = scmp.ne.s32.totalorder %s232_s0, %s104_s13  ;;  %s16_s10 = int_to_ptr.vmem [resolvable:$true] %s15_s10 }
   0x4   :  { %p108_p1 = scmp.lt.u32.totalorder %s104_s13, %s232_s0 }
   0x6   :  { %p110_p2 = pnand %p108_p1, %p105_p0 }
   0x8   :  { %113 = shalt.err (!%p110_p2)
}
   0x9   :  { %s114_s18 = scalar_lea.vmem %s16_s10, 512  ;;  %p119_p4 = scmp.lt.s32.totalorder %s16_s10, %s16_s10 }
   0xa   :  { %p115_p3 = scmp.ne.s32.totalorder %s16_s10, %s114_s18  ;;  %p120_p5 = scmp.lt.s32.totalorder %s114_s18, %s114_s18 }
   0xc   :  { %p121_p6 = por %p120_p5, %p119_p4 }
   0xe   :  { %p122_p7 = pnand %p121_p6, %p115_p3 }
  0x10   :  { %125 = shalt.err (!%p122_p7)
}
  0x11   :  { %s177_s19 = smov 128   ;;  %s178_s20 = smov 8  }
  0x12   :  { %21 = dma.hbm_to_vmem [thread:$0]  %s232_s0, 512, %s16_s10, [#allocation3], %s177_s19, %s177_s19, %s178_s20  }
  0x13   :  { %s179_s23 = smov [#allocation5]   ;;  %s126_s27 = scalar_lea.hbm %s233_s1, 512 }
  0x14   :  { %s27_s24 = sshll.u32 %s179_s23, 4  ;;  %p127_p8 = scmp.ne.s32.totalorder %s233_s1, %s126_s27  ;;  %s28_s24 = int_to_ptr.vmem [resolvable:$true] %s27_s24 }
  0x15   :  { %p130_p9 = scmp.lt.u32.totalorder %s126_s27, %s233_s1 }
  0x17   :  { %p132_p10 = pnand %p130_p9, %p127_p8 }
  0x19   :  { %135 = shalt.err (!%p132_p10)
}
  0x1a   :  { %s136_s4 = scalar_lea.vmem %s28_s24, 512  ;;  %p141_p12 = scmp.lt.s32.totalorder %s28_s24, %s28_s24 }
  0x1b   :  { %p137_p11 = scmp.ne.s32.totalorder %s28_s24, %s136_s4  ;;  %p142_p13 = scmp.lt.s32.totalorder %s136_s4, %s136_s4 }
  0x1d   :  { %p143_p0 = por %p142_p13, %p141_p12 }
  0x1f   :  { %p144_p1 = pnand %p143_p0, %p137_p11 }
  0x21   :  { %147 = shalt.err (!%p144_p1)
}
  0x22   :  { %33 = dma.hbm_to_vmem [thread:$0]  %s233_s1, 512, %s28_s24, [#allocation6], %s177_s19, %s177_s19, %s178_s20  }
  0x23   :  { %170 = dma.done.wait [#allocation3], 512  }
  0x24   :  { %171 = vsyncadd [#allocation3], 4294966784 }
  0x25   :  { %172 = dma.done.wait [#allocation6], 512  }
  0x26   :  { %173 = vsyncadd [#allocation6], 4294966784  ;;  %v40_v0 = vld [vmem:[#allocation2] sm:$0xff]  ;;  %v42_v1 = vld [vmem:[#allocation2 + $0x10] sm:$0xff]  ;;  %s180_s1 = smov [#allocation7]  }
  0x27   :  { %v41_v2 = vld [vmem:[#allocation2 + $0x8] sm:$0xff]  ;;  %v43_v3 = vld [vmem:[#allocation2 + $0x18] sm:$0xff]  ;;  %v44_v4 = vld [vmem:[#allocation5] sm:$0xff]  ;;  %v48_v5 = vmul.f32 0.5, %v42_v1  ;;  %s87_s6 = sshll.u32 %s180_s1, 4  ;;  %s88_s6 = int_to_ptr.vmem [resolvable:$true] %s87_s6 }
  0x28   :  { %v45_v6 = vld [vmem:[#allocation5 + $0x8] sm:$0xff]  ;;  %v46_v7 = vld [vmem:[#allocation5 + $0x10] sm:$0xff]  ;;  %v47_v8 = vld [vmem:[#allocation5 + $0x18] sm:$0xff]  ;;  %v49_v9 = vmul.f32 0.5, %v43_v3  ;;  %v64_v20 = vmul.f32 %v43_v3, %v42_v1  ;;  %s148_s7 = scalar_lea.vmem %s88_s6, 128  ;;  %p153_p3 = scmp.lt.s32.totalorder %s88_s6, %s88_s6 }
  0x29   :  { %v50_v10 = vmul.f32 0.5, %v46_v7  ;;  %v51_v11 = vmul.f32 0.5, %v47_v8  ;;  %v52_v12 = vsub.f32 %v40_v0, %v48_v5  ;;  %v54_v13 = vadd.f32 %v48_v5, %v40_v0  ;;  %p149_p2 = scmp.ne.s32.totalorder %s88_s6, %s148_s7  ;;  %p154_p4 = scmp.lt.s32.totalorder %s148_s7, %s148_s7 }
  0x2a   :  { %v53_v14 = vsub.f32 %v41_v2, %v49_v9  ;;  %v55_v15 = vadd.f32 %v49_v9, %v41_v2  ;;  %v65_v21 = vmul.f32 %v47_v8, %v46_v7 }
  0x2b   :  { %v56_v16 = vsub.f32 %v44_v4, %v50_v10  ;;  %v57_v17 = vsub.f32 %v45_v6, %v51_v11  ;;  %v58_v18 = vadd.f32 %v50_v10, %v44_v4  ;;  %v59_v19 = vadd.f32 %v51_v11, %v45_v6  ;;  %p155_p5 = por %p154_p4, %p153_p3 }
  0x2c   :  { %v73_v28 = vadd.f32 %v65_v21, %v64_v20 }
  0x2d   :  { %v60_v22 = vmax.f32 %v52_v12, %v56_v16  ;;  %v61_v23 = vmax.f32 %v53_v14, %v57_v17  ;;  %v62_v24 = vmin.f32 %v54_v13, %v58_v18  ;;  %v63_v25 = vmin.f32 %v55_v15, %v59_v19  ;;  %p156_p6 = pnand %p155_p5, %p149_p2 }
  0x2f   :  { %vm66_vm0 = vcmp.lt.f32.partialorder %v60_v22, %v62_v24  ;;  %vm67_vm1 = vcmp.lt.f32.partialorder %v61_v23, %v63_v25  ;;  %v69_v26 = vsub.f32 %v62_v24, %v60_v22  ;;  %v70_v27 = vsub.f32 %v63_v25, %v61_v23 }
  0x30   :  { %vm68_vm2 = vmand %vm66_vm0, %vm67_vm1 }
  0x31   :  { %v71_v29 = vmul.f32 %v70_v27, %v69_v26 }
  0x33   :  { %v72_v30 = vsel %vm68_vm2, %v71_v29, 0.0 }
  0x34   :  { %v74_v31 = vsub.f32 %v73_v28, %v72_v30 }
  0x36   :  { %v75_v32 = vadd.f32 1e-16, %v74_v31 }
  0x38   :  { %102 = vrcp.f32 %v75_v32 }
  0x42   :  { %v103_v33 = vpop.eup %102 }
  0x43   :  { %v77_v34 = vmul.f32 %v103_v33, %v72_v30 }
  0x45   :  { %v78_v35 = vmul.f32 %v77_v34, %v77_v34 }
  0x47   :  { %v79_v36 = vsub.f32 1.0, %v78_v35 }
  0x49   :  { %80 = vst [vmem:[#allocation7] sm:$0xff] %v79_v36 }
  0x4a   :  { %159 = shalt.err (!%p156_p6)
}
  0x4b   :  { %s160_s10 = scalar_lea.hbm %s234_s2, 128 }
  0x4c   :  { %p161_p7 = scmp.ne.s32.totalorder %s234_s2, %s160_s10  ;;  %p164_p8 = scmp.lt.u32.totalorder %s160_s10, %s234_s2 }
  0x4e   :  { %p166_p9 = pnand %p164_p8, %p161_p7 }
  0x50   :  { %169 = shalt.err (!%p166_p9)
}
  0x51   :  { %90 = dma.vmem_to_hbm [thread:$0]  %s88_s6, 128, %s234_s2, [#allocation4]  }
  0x52   :  { %174 = dma.done.wait [#allocation4], 128  }
  0x53   :  { %175 = vsyncadd [#allocation4], 4294967168 }
  0x54   :  { %94 = vsyncpa [#allocation3], 1 }
  0x55   :  { %95 = vsyncpa [#allocation6], 1 }
  0x56   :  { %96 = vsyncpa [#allocation4], 1 }

</bundles_post_ra>
